<compile_context>
chip_gen: v6e
topology: v6e:2x2x1
jax: 0.10.0
libtpu: 0.0.40
codegen_flags: <defaults>
</compile_context>

<pallas_src>
import jax
import jax.numpy as jnp
from jax.experimental import pallas as pl
from jax.experimental.pallas import tpu as pltpu

# Model hyper-parameters implied by the PyTorch module / original script
m = 2          # embedding dim
n_step = 2     # context length
n_hidden = 2   # hidden size
n_class = 7    # vocab size ("i like dog", "i love coffee", "i hate milk" -> 7 words)
batch = 3      # number of training sentences

# TPU lane/sublane-dense padded sizes
LANE = 128
SUBLANE = 8
B_TILE = 8                      # batch rows per grid step (sublane-dense)
NH_PAD = LANE                   # n_hidden  2 -> 128 lanes
NC_PAD = LANE                   # n_class   7 -> 128 lanes
N_PAD = NH_PAD + NC_PAD         # merged [H | W] output width = 256


def _round_up(x, k):
    return (x + k - 1) // k * k


def nnlm_kernel(ids_ref, c_ref, hw_ref, db_ref, u_ref, out_ref):
    """Fused NNLM forward on one batch tile.

    ids_ref: (B_TILE, n_step)     int32  token indices (padded rows = 0)
    c_ref:   (NC_PAD, m)          f32    embedding table, zero-padded rows
    hw_ref:  (n_step*m, N_PAD)    f32    cols [0:NH_PAD)=H, [NH_PAD:NH_PAD+n_class)=W
    db_ref:  (1, N_PAD)           f32    [d | b], zero-padded
    u_ref:   (NH_PAD, NC_PAD)     f32    zero-padded U
    out_ref: (B_TILE, NC_PAD)     f32    lane-dense logits (slice [:, :n_class] outside)
    """
    bt = ids_ref.shape[0]
    ids = ids_ref[...]                                   # (bt, n_step) i32
    c_tbl = c_ref[...]                                   # (NC_PAD, m)
    hw = hw_ref[...]                                     # (n_step*m, N_PAD)

    class_iota = jax.lax.broadcasted_iota(jnp.int32, (bt, NC_PAD), 1)

    # Merged accumulator t = [d | b] + x @ [H | W]; the embedding lookup is done
    # per context position as a one-hot matmul (exact row selection on the MXU),
    # and its contribution is folded straight into the merged K-split matmul.
    acc = db_ref[...]                                    # (1, N_PAD); broadcasts on first add
    for s in range(n_step):                              # static unroll (n_step = 2)
        onehot = jnp.where(ids[:, s:s + 1] == class_iota, 1.0, 0.0)          # (bt, NC_PAD)
        emb_s = jnp.dot(onehot, c_tbl, preferred_element_type=jnp.float32)   # (bt, m)
        acc = acc + jnp.dot(emb_s, hw[s * m:(s + 1) * m, :],
                            preferred_element_type=jnp.float32)              # (bt, N_PAD)

    hidden = jnp.tanh(acc[:, :NH_PAD])                   # (bt, NH_PAD)  -- EUP
    out_ref[...] = acc[:, NH_PAD:] + jnp.dot(hidden, u_ref[...],
                                             preferred_element_type=jnp.float32)


@jax.jit
def nnlm_forward(token_ids, params):
    """token_ids: (B, n_step) int32. Returns logits (B, n_class) f32."""
    C, H, W, d, U, b = (params["C"], params["H"], params["W"],
                        params["d"], params["U"], params["b"])
    B = token_ids.shape[0]
    b_pad = _round_up(B, B_TILE)
    n_tiles = b_pad // B_TILE

    # Pack operands into lane/sublane-dense, zero-padded slabs (weight packing
    # would be hoisted out of the step function in a real training loop).
    ids_pad = jnp.zeros((b_pad, n_step), jnp.int32).at[:B].set(token_ids.astype(jnp.int32))
    c_pad = jnp.zeros((NC_PAD, m), jnp.float32).at[:n_class].set(C)
    hw = jnp.zeros((n_step * m, N_PAD), jnp.float32)
    hw = hw.at[:, :n_hidden].set(H).at[:, NH_PAD:NH_PAD + n_class].set(W)
    db = jnp.zeros((1, N_PAD), jnp.float32)
    db = db.at[0, :n_hidden].set(d).at[0, NH_PAD:NH_PAD + n_class].set(b)
    u_pad = jnp.zeros((NH_PAD, NC_PAD), jnp.float32).at[:n_hidden, :n_class].set(U)

    out_pad = pl.pallas_call(
        nnlm_kernel,
        out_shape=jax.ShapeDtypeStruct((b_pad, NC_PAD), jnp.float32),
        grid=(n_tiles,),
        in_specs=[
            pl.BlockSpec((B_TILE, n_step), lambda i: (i, 0)),         # ids: tiled over batch
            pl.BlockSpec((NC_PAD, m), lambda i: (0, 0)),              # C (resident)
            pl.BlockSpec((n_step * m, N_PAD), lambda i: (0, 0)),      # [H | W]
            pl.BlockSpec((1, N_PAD), lambda i: (0, 0)),               # [d | b]
            pl.BlockSpec((NH_PAD, NC_PAD), lambda i: (0, 0)),         # U
        ],
        out_specs=pl.BlockSpec((B_TILE, NC_PAD), lambda i: (i, 0)),   # lane-dense logits
        compiler_params=pltpu.CompilerParams(dimension_semantics=("parallel",)),
    )(ids_pad, c_pad, hw, db, u_pad)

    return out_pad[:B, :n_class]


def init_params(key):
    kC, kH, kW, kd, kU, kb = jax.random.split(key, 6)
    return {
        "C": jax.random.normal(kC, (n_class, m), dtype=jnp.float32),
        "H": jax.random.normal(kH, (n_step * m, n_hidden), dtype=jnp.float32),
        "W": jax.random.normal(kW, (n_step * m, n_class), dtype=jnp.float32),
        "d": jax.random.normal(kd, (n_hidden,), dtype=jnp.float32),
        "U": jax.random.normal(kU, (n_hidden, n_class), dtype=jnp.float32),
        "b": jax.random.normal(kb, (n_class,), dtype=jnp.float32),
    }


if __name__ == "__main__":
    key = jax.random.PRNGKey(0)
    pkey, xkey = jax.random.split(key)
    params = init_params(pkey)

    # Synthetic context token indices, shape (batch, n_step), values in [0, n_class)
    token_ids = jax.random.randint(xkey, (batch, n_step), 0, n_class, dtype=jnp.int32)

    logits = jax.block_until_ready(nnlm_forward(token_ids, params))

    # Reference check against plain-JAX computation of the PyTorch formula.
    x_ref = jnp.take(params["C"], token_ids, axis=0).reshape(batch, n_step * m)
    hidden_ref = jnp.tanh(params["d"] + x_ref @ params["H"])
    ref = params["b"] + x_ref @ params["W"] + hidden_ref @ params["U"]
    assert logits.shape == (batch, n_class)
    assert jnp.allclose(logits, ref, atol=1e-5, rtol=1e-5)

    print("KERNEL_OK")
</pallas_src>

<mosaic_0001>
module attributes {stable_mosaic.version = 11 : i64} {
  func.func @nnlm_kernel(%arg0: i32, %arg1: memref<8x2xi32, #tpu.memory_space<vmem>>, %arg2: memref<128x2xf32, #tpu.memory_space<vmem>>, %arg3: memref<4x256xf32, #tpu.memory_space<vmem>>, %arg4: memref<1x256xf32, #tpu.memory_space<vmem>>, %arg5: memref<128x128xf32, #tpu.memory_space<vmem>>, %arg6: memref<8x128xf32, #tpu.memory_space<vmem>>) attributes {dimension_semantics = [#tpu.dimension_semantics<parallel>], iteration_bounds = array<i64: 1>, scalar_prefetch = 0 : i64, scratch_operands = 0 : i64, tpu.core_type = #tpu.core_type<tc>, window_params = [{transform_indices = @transform_0, window_bounds = array<i64: 8, 2>}, {pipeline_mode = #tpu.pipeline_mode<synchronous>, transform_indices = @transform_1, window_bounds = array<i64: 128, 2>}, {pipeline_mode = #tpu.pipeline_mode<synchronous>, transform_indices = @transform_2, window_bounds = array<i64: 4, 256>}, {pipeline_mode = #tpu.pipeline_mode<synchronous>, transform_indices = @transform_3, window_bounds = array<i64: 1, 256>}, {pipeline_mode = #tpu.pipeline_mode<synchronous>, transform_indices = @transform_4, window_bounds = array<i64: 128, 128>}, {transform_indices = @transform_5, window_bounds = array<i64: 8, 128>}]} {
    %c0 = arith.constant 0 : index
    %c0_0 = arith.constant 0 : index
    %0 = vector.load %arg1[%c0, %c0_0] : memref<8x2xi32, #tpu.memory_space<vmem>>, vector<8x2xi32>
    %c0_1 = arith.constant 0 : index
    %c0_2 = arith.constant 0 : index
    %1 = vector.load %arg2[%c0_1, %c0_2] : memref<128x2xf32, #tpu.memory_space<vmem>>, vector<128x2xf32>
    %c0_3 = arith.constant 0 : index
    %c0_4 = arith.constant 0 : index
    %2 = vector.load %arg3[%c0_3, %c0_4] : memref<4x256xf32, #tpu.memory_space<vmem>>, vector<4x256xf32>
    %3 = tpu.iota {dimensions = array<i32: 1>} : vector<8x128xi32>
    %c0_5 = arith.constant 0 : index
    %c0_6 = arith.constant 0 : index
    %4 = vector.load %arg4[%c0_5, %c0_6] : memref<1x256xf32, #tpu.memory_space<vmem>>, vector<1x256xf32>
    %5 = vector.extract_strided_slice %0 {offsets = [0, 0], sizes = [8, 1], strides = [1, 1]} : vector<8x2xi32> to vector<8x1xi32>
    %6 = vector.broadcast %5 : vector<8x1xi32> to vector<8x128xi32>
    %7 = arith.cmpi eq, %6, %3 : vector<8x128xi32>
    %cst = arith.constant 1.000000e+00 : f32
    %cst_7 = arith.constant 0.000000e+00 : f32
    %8 = vector.broadcast %cst : f32 to vector<8x128xf32>
    %9 = vector.broadcast %cst_7 : f32 to vector<8x128xf32>
    %10 = arith.select %7, %8, %9 : vector<8x128xi1>, vector<8x128xf32>
    %cst_8 = arith.constant dense<0.000000e+00> : vector<8x2xf32>
    %11 = tpu.matmul %10, %1, %cst_8 {dimension_numbers = #tpu.dot_dimension_numbers<[1], [0], [0], [1], [0, 0, 1, 1], [], []>} : vector<8x128xf32>, vector<128x2xf32>, vector<8x2xf32> -> vector<8x2xf32>
    %12 = vector.extract_strided_slice %2 {offsets = [0, 0], sizes = [2, 256], strides = [1, 1]} : vector<4x256xf32> to vector<2x256xf32>
    %cst_9 = arith.constant dense<0.000000e+00> : vector<8x256xf32>
    %13 = tpu.matmul %11, %12, %cst_9 {dimension_numbers = #tpu.dot_dimension_numbers<[1], [0], [0], [1], [0, 0, 1, 1], [], []>} : vector<8x2xf32>, vector<2x256xf32>, vector<8x256xf32> -> vector<8x256xf32>
    %14 = vector.broadcast %4 : vector<1x256xf32> to vector<8x256xf32>
    %15 = arith.addf %14, %13 : vector<8x256xf32>
    %16 = vector.extract_strided_slice %0 {offsets = [0, 1], sizes = [8, 1], strides = [1, 1]} : vector<8x2xi32> to vector<8x1xi32>
    %17 = vector.broadcast %16 : vector<8x1xi32> to vector<8x128xi32>
    %18 = arith.cmpi eq, %17, %3 : vector<8x128xi32>
    %cst_10 = arith.constant 1.000000e+00 : f32
    %cst_11 = arith.constant 0.000000e+00 : f32
    %19 = vector.broadcast %cst_10 : f32 to vector<8x128xf32>
    %20 = vector.broadcast %cst_11 : f32 to vector<8x128xf32>
    %21 = arith.select %18, %19, %20 : vector<8x128xi1>, vector<8x128xf32>
    %cst_12 = arith.constant dense<0.000000e+00> : vector<8x2xf32>
    %22 = tpu.matmul %21, %1, %cst_12 {dimension_numbers = #tpu.dot_dimension_numbers<[1], [0], [0], [1], [0, 0, 1, 1], [], []>} : vector<8x128xf32>, vector<128x2xf32>, vector<8x2xf32> -> vector<8x2xf32>
    %23 = vector.extract_strided_slice %2 {offsets = [2, 0], sizes = [2, 256], strides = [1, 1]} : vector<4x256xf32> to vector<2x256xf32>
    %cst_13 = arith.constant dense<0.000000e+00> : vector<8x256xf32>
    %24 = tpu.matmul %22, %23, %cst_13 {dimension_numbers = #tpu.dot_dimension_numbers<[1], [0], [0], [1], [0, 0, 1, 1], [], []>} : vector<8x2xf32>, vector<2x256xf32>, vector<8x256xf32> -> vector<8x256xf32>
    %25 = arith.addf %15, %24 : vector<8x256xf32>
    %26 = vector.extract_strided_slice %25 {offsets = [0, 0], sizes = [8, 128], strides = [1, 1]} : vector<8x256xf32> to vector<8x128xf32>
    %27 = math.tanh %26 : vector<8x128xf32>
    %28 = vector.extract_strided_slice %25 {offsets = [0, 128], sizes = [8, 128], strides = [1, 1]} : vector<8x256xf32> to vector<8x128xf32>
    %c0_14 = arith.constant 0 : index
    %c0_15 = arith.constant 0 : index
    %29 = vector.load %arg5[%c0_14, %c0_15] : memref<128x128xf32, #tpu.memory_space<vmem>>, vector<128x128xf32>
    %cst_16 = arith.constant dense<0.000000e+00> : vector<8x128xf32>
    %30 = tpu.matmul %27, %29, %cst_16 {dimension_numbers = #tpu.dot_dimension_numbers<[1], [0], [0], [1], [0, 0, 1, 1], [], []>} : vector<8x128xf32>, vector<128x128xf32>, vector<8x128xf32> -> vector<8x128xf32>
    %31 = arith.addf %28, %30 : vector<8x128xf32>
    %c0_17 = arith.constant 0 : index
    %c0_18 = arith.constant 0 : index
    %32 = vector.load %arg6[%c0_17, %c0_18] : memref<8x128xf32, #tpu.memory_space<vmem>>, vector<8x128xf32>
    tpu.vector_store %arg6[%c0_17, %c0_18], %31 {strides = array<i32>} : memref<8x128xf32, #tpu.memory_space<vmem>>, vector<8x128xf32>,
    return
  }
  func.func @transform_0(%arg0: i32) -> (i32, i32) {
    %c0_i32 = arith.constant 0 : i32
    %c0_i32_0 = arith.constant 0 : i32
    return %arg0, %c0_i32 : i32, i32
  }
  func.func @transform_1(%arg0: i32) -> (i32, i32) {
    %c0_i32 = arith.constant 0 : i32
    %c0_i32_0 = arith.constant 0 : i32
    %c0_i32_1 = arith.constant 0 : i32
    return %c0_i32, %c0_i32_0 : i32, i32
  }
  func.func @transform_2(%arg0: i32) -> (i32, i32) {
    %c0_i32 = arith.constant 0 : i32
    %c0_i32_0 = arith.constant 0 : i32
    %c0_i32_1 = arith.constant 0 : i32
    return %c0_i32, %c0_i32_0 : i32, i32
  }
  func.func @transform_3(%arg0: i32) -> (i32, i32) {
    %c0_i32 = arith.constant 0 : i32
    %c0_i32_0 = arith.constant 0 : i32
    %c0_i32_1 = arith.constant 0 : i32
    return %c0_i32, %c0_i32_0 : i32, i32
  }
  func.func @transform_4(%arg0: i32) -> (i32, i32) {
    %c0_i32 = arith.constant 0 : i32
    %c0_i32_0 = arith.constant 0 : i32
    %c0_i32_1 = arith.constant 0 : i32
    return %c0_i32, %c0_i32_0 : i32, i32
  }
  func.func @transform_5(%arg0: i32) -> (i32, i32) {
    %c0_i32 = arith.constant 0 : i32
    %c0_i32_0 = arith.constant 0 : i32
    return %arg0, %c0_i32 : i32, i32
  }
}

</mosaic_0001>

<bundles_post_ra>
// kernel: nnlm_forward.1
= control target key start
LH: loop header
LB: loop body
LE: loop exit
PB: predicated region body
PF: predicated region fallthrough
CT: control target
= control target key end

     0   :  { %v635_v0 = vmov 0   ;;  %v636_v2 = vmov 0.0   ;;  %v637_v7 = vmov 1   ;;  %vm638_vm0 = vmmov 0   ;;  %s838_s0 = inlined_call_operand.vmem [shape: s32[8,2], index: 0, kind: input, shape index: {}]   ;;  %s839_s1 = inlined_call_operand.vmem [shape: f32[128,2], index: 1, kind: input, shape index: {}]   ;;  %s840_s2 = inlined_call_operand.vmem [shape: f32[4,256], index: 2, kind: input, shape index: {}]   ;;  %s841_s4 = inlined_call_operand.vmem [shape: f32[128,128], index: 4, kind: input, shape index: {}]   ;;  %s842_s3 = inlined_call_operand.vmem [shape: f32[1,256], index: 3, kind: input, shape index: {}]   ;;  %s843_s5 = inlined_call_operand.vmem [shape: f32[8,128], index: 5, kind: output, shape index: {}]  }
   0x1   :  { %630 = vset.pattern.permute.xlu0 %v635_v0  ;;  %v20_v1 = vld [vmem:[%s838_s0] sm:$0xff]  ;;  %520 = vmatprep.subr.mxu0 %v636_v2  ;;  %v36_v3 = vld [vmem:[%s839_s1 + $0x78] sm:$0xff]  ;;  %v35_v4 = vld [vmem:[%s839_s1 + $0x70] sm:$0xff]  ;;  %vm122_vm1 = vcmask 1041408   ;;  %v38_v22 = vlaneseq  ;;  %v639_v25 = vmov 1.0   ;;  %vm118_vm4 = vcmask 15360  }
   0x2   :  { %42 = vperm.xlu0 %630, %v20_v1   ;;  %521 = vmatpush3.msra.mxu0 %v36_v3  ;;  %v34_v5 = vld [vmem:[%s839_s1 + $0x68] sm:$0xff]  ;;  %v33_v6 = vld [vmem:[%s839_s1 + $0x60] sm:$0xff]  ;;  %v32_v8 = vld [vmem:[%s839_s1 + $0x58] sm:$0xff] }
   0x3   :  { %522 = vmatprep.subr.mxu0 %v636_v2  ;;  %555 = vmatprep.subr.mxu1 %v636_v2  ;;  %v31_v9 = vld [vmem:[%s839_s1 + $0x50] sm:$0xff]  ;;  %v30_v10 = vld [vmem:[%s839_s1 + $0x48] sm:$0xff]  ;;  %v29_v11 = vld [vmem:[%s839_s1 + $0x40] sm:$0xff]  ;;  %v39_v23 = vand.u32 127, %v38_v22  ;;  %v200_v38 = vshrl.u32 %v38_v22, 7 }
   0x4   :  { %523 = vmatpush3.msra.mxu0 %v35_v4  ;;  %556 = vmatpush3.msra.mxu1 %v36_v3  ;;  %v28_v12 = vld [vmem:[%s839_s1 + $0x38] sm:$0xff]  ;;  %v27_v13 = vld [vmem:[%s839_s1 + $0x30] sm:$0xff]  ;;  %v26_v14 = vld [vmem:[%s839_s1 + $0x28] sm:$0xff] }
   0x5   :  { %524 = vmatprep.subr.mxu0 %v636_v2  ;;  %557 = vmatprep.subr.mxu1 %v636_v2  ;;  %v25_v15 = vld [vmem:[%s839_s1 + $0x20] sm:$0xff]  ;;  %v24_v16 = vld [vmem:[%s839_s1 + $0x18] sm:$0xff]  ;;  %v23_v17 = vld [vmem:[%s839_s1 + $0x10] sm:$0xff]  ;;  %v205_v39 = vsub.s32 1, %v200_v38  ;;  %v201_v53 = vsub.s32 0, %v200_v38 }
   0x6   :  { %631 = vset.pattern.permute.xlu0 %v637_v7  ;;  %525 = vmatpush3.msra.mxu0 %v34_v5  ;;  %v22_v18 = vld [vmem:[%s839_s1 + $0x8] sm:$0xff]  ;;  %v37_v19 = vld [vmem:[%s840_s2] sm:$0xff]  ;;  %v384_v28 = vld [vmem:[%s841_s4 + $0x78] sm:$0xff] }
   0x7   :  { %212 = vperm.xlu0 %631, %v20_v1   ;;  %526 = vmatprep.subr.mxu0 %v636_v2  ;;  %v21_v20 = vld [vmem:[%s839_s1] sm:$0xff]  ;;  %v117_v21 = vcombine.high %v37_v19, %v37_v19  ;;  %v383_v29 = vld [vmem:[%s841_s4 + $0x70] sm:$0xff]  ;;  %v382_v30 = vld [vmem:[%s841_s4 + $0x68] sm:$0xff]  ;;  %v286_v33 = vrot.slane %v37_v19, 2 }
   0x8   :  { %527 = vmatpush3.msra.mxu0 %v33_v6  ;;  %558 = vmatpush3.msra.mxu1 %v35_v4  ;;  %v381_v31 = vld [vmem:[%s841_s4 + $0x60] sm:$0xff]  ;;  %v380_v32 = vld [vmem:[%s841_s4 + $0x58] sm:$0xff]  ;;  %v379_v41 = vld [vmem:[%s841_s4 + $0x50] sm:$0xff] }
   0x9   :  { %528 = vmatprep.subr.mxu0 %v636_v2  ;;  %559 = vmatprep.subr.mxu1 %v636_v2  ;;  %v287_v27 = vrot.slane %v117_v21, 2  ;;  %v40_v40 = vld [vmem:[%s842_s3] sm:$0x3]  ;;  %v378_v43 = vld [vmem:[%s841_s4 + $0x48] sm:$0xff]  ;;  %v376_v45 = vld [vmem:[%s841_s4 + $0x38] sm:$0xff] }
   0xa   :  { %529 = vmatpush3.msra.mxu0 %v32_v8  ;;  %560 = vmatpush3.msra.mxu1 %v34_v5  ;;  %v206_v42 = vrot.slane %v40_v40, %v205_v39  ;;  %v377_v44 = vld [vmem:[%s841_s4 + $0x40] sm:$0xff]  ;;  %v375_v46 = vld [vmem:[%s841_s4 + $0x30] sm:$0xff]  ;;  %v374_v47 = vld [vmem:[%s841_s4 + $0x28] sm:$0xff]  ;;  %v202_v55 = vrot.slane %v40_v40, %v201_v53 }
   0xb   :  { %530 = vmatprep.subr.mxu0 %v636_v2  ;;  %561 = vmatprep.subr.mxu1 %v636_v2  ;;  %v373_v48 = vld [vmem:[%s841_s4 + $0x20] sm:$0xff]  ;;  %v372_v49 = vld [vmem:[%s841_s4 + $0x18] sm:$0xff]  ;;  %v371_v50 = vld [vmem:[%s841_s4 + $0x10] sm:$0xff] }
   0xc   :  { %531 = vmatpush3.msra.mxu0 %v31_v9  ;;  %562 = vmatpush3.msra.mxu1 %v33_v6  ;;  %v370_v51 = vld [vmem:[%s841_s4 + $0x8] sm:$0xff]  ;;  %v369_v52 = vld [vmem:[%s841_s4] sm:$0xff] }
   0xd   :  { %532 = vmatprep.subr.mxu0 %v636_v2  ;;  %563 = vmatprep.subr.mxu1 %v636_v2 }
   0xe   :  { %533 = vmatpush3.msra.mxu0 %v30_v10  ;;  %564 = vmatpush3.msra.mxu1 %v32_v8 }
   0xf   :  { %534 = vmatprep.subr.mxu0 %v636_v2  ;;  %565 = vmatprep.subr.mxu1 %v636_v2 }
  0x10   :  { %535 = vmatpush3.msra.mxu0 %v29_v11  ;;  %566 = vmatpush3.msra.mxu1 %v31_v9 }
  0x11   :  { %536 = vmatprep.subr.mxu0 %v636_v2  ;;  %567 = vmatprep.subr.mxu1 %v636_v2 }
  0x12   :  { %537 = vmatpush3.msra.mxu0 %v28_v12  ;;  %568 = vmatpush3.msra.mxu1 %v30_v10 }
  0x13   :  { %538 = vmatprep.subr.mxu0 %v636_v2  ;;  %569 = vmatprep.subr.mxu1 %v636_v2 }
  0x14   :  { %539 = vmatpush3.msra.mxu0 %v27_v13  ;;  %570 = vmatpush3.msra.mxu1 %v29_v11 }
  0x15   :  { %540 = vmatprep.subr.mxu0 %v636_v2  ;;  %571 = vmatprep.subr.mxu1 %v636_v2 }
  0x16   :  { %541 = vmatpush3.msra.mxu0 %v26_v14  ;;  %572 = vmatpush3.msra.mxu1 %v28_v12 }
  0x17   :  { %542 = vmatprep.subr.mxu0 %v636_v2  ;;  %573 = vmatprep.subr.mxu1 %v636_v2 }
  0x18   :  { %543 = vmatpush3.msra.mxu0 %v25_v15  ;;  %574 = vmatpush3.msra.mxu1 %v27_v13 }
  0x19   :  { %544 = vmatprep.subr.mxu0 %v636_v2  ;;  %575 = vmatprep.subr.mxu1 %v636_v2 }
  0x1a   :  { %545 = vmatpush3.msra.mxu0 %v24_v16  ;;  %576 = vmatpush3.msra.mxu1 %v26_v14 }
  0x1b   :  { %546 = vmatprep.subr.mxu0 %v636_v2  ;;  %577 = vmatprep.subr.mxu1 %v636_v2 }
  0x1c   :  { %547 = vmatpush3.msra.mxu0 %v23_v17  ;;  %578 = vmatpush3.msra.mxu1 %v25_v15 }
  0x1d   :  { %548 = vmatprep.subr.mxu0 %v636_v2  ;;  %579 = vmatprep.subr.mxu1 %v636_v2 }
  0x1e   :  { %549 = vmatpush3.msra.mxu0 %v22_v18  ;;  %580 = vmatpush3.msra.mxu1 %v24_v16 }
  0x1f   :  { %550 = vmatprep.subr.mxu0 %v636_v2  ;;  %552 = vmatprep.mubr.msk.f32.mxu0 %vm638_vm0, %v636_v2 }
  0x20   :  { %551 = vmatpush3.msra.mxu0 %v21_v20  ;;  %581 = vmatprep.subr.mxu1 %v636_v2 }
  0x21   :  { %582 = vmatpush3.msra.mxu1 %v23_v17  ;;  %587 = vmatprep.mubr.msk.f32.mxu1 %vm638_vm0, %v636_v2 }
  0x22   :  { %583 = vmatprep.subr.mxu1 %v636_v2  ;;  %462 = vmatprep.subr.msk.mxu0 %vm122_vm1, %v117_v21 }
  0x23   :  { %584 = vmatpush3.msra.mxu1 %v22_v18 }
  0x24   :  { %585 = vmatprep.subr.mxu1 %v636_v2 }
  0x25   :  { %586 = vmatpush3.msra.mxu1 %v21_v20 }
  0x26   :  { %590 = vmatprep.subr.mxu1 %v636_v2 }
  0x7d   :  { %v43_v24 = vpop.permute.xlu0 %42 }
  0x7e   :  { %vm44_vm2 = vcmp.eq.s32.totalorder %v43_v24, %v39_v23 }
  0x7f   :  { %553 = vmatmul.mubr.msk.f32.vlgmr.msra.gmra.mxu0 %vm44_vm2, %v639_v25 }
  0x80   :  { %463 = vmatpush1.msk.msra.mxu0 %vm122_vm1, %v37_v19  ;;  %191 = vmatprep.mubr.f32.mxu0 %v636_v2 }
  0x81   :  { %466 = vmatprep.subr.msk.mxu0 %vm122_vm1, %v287_v27 }
  0x82   :  { %v213_v26 = vpop.permute.xlu0 %212 }
  0x83   :  { %vm214_vm3 = vcmp.eq.s32.totalorder %v213_v26, %v39_v23 }
  0x84   :  { %588 = vmatmul.mubr.msk.f32.vlgmr.msra.gmra.mxu1 %vm214_vm3, %v639_v25 }
  0x85   :  { %622 = vmatprep.mubr.msk.f32.mxu1 %vm638_vm0, %v636_v2  ;;  %591 = vmatpush3.msra.mxu1 %v384_v28 }
  0x86   :  { %592 = vmatprep.subr.mxu1 %v636_v2 }
  0x87   :  { %593 = vmatpush3.msra.mxu1 %v383_v29 }
  0x88   :  { %594 = vmatprep.subr.mxu1 %v636_v2 }
  0x89   :  { %595 = vmatpush3.msra.mxu1 %v382_v30 }
  0x8a   :  { %596 = vmatprep.subr.mxu1 %v636_v2 }
  0x8b   :  { %597 = vmatpush3.msra.mxu1 %v381_v31 }
  0x8c   :  { %598 = vmatprep.subr.mxu1 %v636_v2 }
  0x8d   :  { %599 = vmatpush3.msra.mxu1 %v380_v32 }
  0x8e   :  { %600 = vmatprep.subr.mxu1 %v636_v2 }
  0x8f   :  { %601 = vmatpush3.msra.mxu1 %v379_v41 }
  0x90   :  { %602 = vmatprep.subr.mxu1 %v636_v2 }
  0x91   :  { %603 = vmatpush3.msra.mxu1 %v378_v43 }
  0x92   :  { %604 = vmatprep.subr.mxu1 %v636_v2 }
  0x93   :  { %605 = vmatpush3.msra.mxu1 %v377_v44 }
  0x94   :  { %606 = vmatprep.subr.mxu1 %v636_v2 }
  0x95   :  { %607 = vmatpush3.msra.mxu1 %v376_v45 }
  0x96   :  { %608 = vmatprep.subr.mxu1 %v636_v2 }
  0x97   :  { %609 = vmatpush3.msra.mxu1 %v375_v46 }
  0x98   :  { %610 = vmatprep.subr.mxu1 %v636_v2 }
  0x99   :  { %611 = vmatpush3.msra.mxu1 %v374_v47 }
  0x9a   :  { %612 = vmatprep.subr.mxu1 %v636_v2 }
  0x9b   :  { %613 = vmatpush3.msra.mxu1 %v373_v48 }
  0x9c   :  { %614 = vmatprep.subr.mxu1 %v636_v2 }
  0x9d   :  { %615 = vmatpush3.msra.mxu1 %v372_v49 }
  0x9e   :  { %616 = vmatprep.subr.mxu1 %v636_v2 }
  0x9f   :  { %617 = vmatpush3.msra.mxu1 %v371_v50 }
  0xa0   :  { %618 = vmatprep.subr.mxu1 %v636_v2 }
  0xa1   :  { %619 = vmatpush3.msra.mxu1 %v370_v51 }
  0xa2   :  { %620 = vmatprep.subr.mxu1 %v636_v2 }
  0xa3   :  { %621 = vmatpush3.msra.mxu1 %v369_v52 }
 0x13f   :  { %v112_v34 = vpop.f32.mrf.mxu0 }
 0x140   :  { %464 = vmatmul.mubr.msk.f32.vlgmr.msra.gmra.mxu0 %vm118_vm4, %v112_v34 }
 0x141   :  { %v554_v35 = vpop.f32.mrf.mxu0  ;;  %467 = vmatpush1.msk.msra.mxu0 %vm122_vm1, %v286_v33  ;;  %359 = vmatprep.mubr.f32.mxu0 %v636_v2 }
 0x144   :  { %v282_v36 = vpop.f32.mrf.mxu1 }
 0x145   :  { %468 = vmatmul.mubr.msk.f32.vlgmr.msra.gmra.mxu0 %vm118_vm4, %v282_v36 }
 0x146   :  { %v589_v37 = vpop.f32.mrf.mxu1 }
 0x200   :  { %v193_v54 = vpop.f32.mrf.mxu0 }
 0x201   :  { %v209_v58 = vadd.f32 %v202_v55, %v193_v54 }
 0x202   :  { %v195_v56 = vpop.f32.mrf.mxu0 }
 0x203   :  { %v210_v57 = vadd.f32 %v206_v42, %v195_v56 }
 0x205   :  { %v361_v59 = vpop.f32.mrf.mxu0 }
 0x206   :  { %v366_v60 = vadd.f32 %v361_v59, %v209_v58 }
 0x207   :  { %v363_v62 = vpop.f32.mrf.mxu0 }
 0x208   :  { %633 = vtanh.f32 %v366_v60  ;;  %v367_v63 = vadd.f32 %v363_v62, %v210_v57 }
 0x215   :  { %v634_v61 = vpop.eup %633 }
 0x216   :  { %623 = vmatmul.mubr.f32.vlgmr.msra.gmra.mxu1 %v634_v61 }
 0x2d6   :  { %v451_v0 = vpop.f32.mrf.mxu1 }
 0x2d7   :  { %v455_v1 = vadd.f32 %v451_v0, %v367_v63 }
 0x2d8   :  { %v624_v3 = vpop.f32.mrf.mxu1 }
 0x2d9   :  { %456 = vst [vmem:[%s843_s5] sm:$0xff] %v455_v1 }

</bundles_post_ra>
